<compile_context>
chip_gen: v5e
topology: v5e:2x2
jax: 0.10.0
libtpu: 0.0.40
codegen_flags: <defaults>
</compile_context>

<pallas_src>
import jax
import jax.numpy as jnp
from jax import lax
from jax.experimental import pallas as pl
from jax.experimental.pallas import tpu as pltpu

_EPS = 1e-8  # matches torch.nn.functional.cosine_similarity default eps
_LANES = 128
_SUBLANES = 8
_MAX_BLOCK_BYTES = 4 * 1024 * 1024     # per-input per-buffer block target (~16 MiB pipelined)
_VMEM_LIMIT_BYTES = 32 * 1024 * 1024   # safe on v5e/v6e (128 MiB phys) and v7x (64 MiB phys)


def _round_up(x, m):
    return ((x + m - 1) // m) * m


def _make_kernel(n_rows, g, tile_r):
    """Builds the kernel; n_rows is the TRUE number of rows (pre-padding)."""
    inv_n = 1.0 / float(n_rows)

    def kernel(pred_ref, gt_ref, seg_ref, out_ref, acc_ref):
        step = pl.program_id(0)

        @pl.when(step == 0)
        def _init():
            acc_ref[...] = jnp.zeros_like(acc_ref)

        x = pred_ref[...].astype(jnp.float32)   # (tile_r, C)
        y = gt_ref[...].astype(jnp.float32)
        s = seg_ref[...]                        # (C, g) block-diagonal ones

        # Per-original-row reductions on the otherwise-idle MXU: each packed row
        # holds g original rows along the lane axis; dotting the elementwise
        # products against the segment matrix yields (tile_r, g) per-row sums.
        dot = jnp.dot(x * y, s, preferred_element_type=jnp.float32,
                      precision=lax.Precision.HIGHEST)
        nx = jnp.dot(x * x, s, preferred_element_type=jnp.float32,
                     precision=lax.Precision.HIGHEST)
        ny = jnp.dot(y * y, s, preferred_element_type=jnp.float32,
                     precision=lax.Precision.HIGHEST)

        # Normalization hoisted out of the (rows, D) element loop: one
        # sqrt / clamp / reciprocal per row instead of per element.
        denom = jnp.maximum(jnp.sqrt(nx), _EPS) * jnp.maximum(jnp.sqrt(ny), _EPS)
        cos = dot * pl.reciprocal(denom, approx=False)

        # Mask zero-padded rows (a zero row would otherwise contribute loss = 1).
        row = lax.broadcasted_iota(jnp.int32, (tile_r, g), 0)
        seg_id = lax.broadcasted_iota(jnp.int32, (tile_r, g), 1)
        orig_row = (step * tile_r + row) * g + seg_id
        loss = jnp.where(orig_row < n_rows, 1.0 - cos, 0.0)

        acc_ref[...] = acc_ref[...] + jnp.sum(loss)

        @pl.when(step == pl.num_programs(0) - 1)
        def _finalize():
            out_ref[...] = acc_ref[...] * inv_n

    return kernel


def cosine_similarity_loss(vector_pred, vector_gt):
    """Pallas equivalent of CosineSimilarityLoss.forward; returns a scalar."""
    assert vector_pred.shape == vector_gt.shape
    d = vector_pred.shape[-1]
    pred2d = vector_pred.reshape(-1, d)
    gt2d = vector_gt.reshape(-1, d)
    n = pred2d.shape[0]

    # Lane-dense packing for small feature dims: put g = 128 // D original rows
    # side by side along the lane axis so every vreg lane carries data.
    if d < _LANES and _LANES % d == 0:
        g = _LANES // d
    else:
        g = 1
    c = g * d

    itemsize = jnp.dtype(vector_pred.dtype).itemsize
    rows_fit = max(_SUBLANES,
                   (_MAX_BLOCK_BYTES // (c * itemsize)) // _SUBLANES * _SUBLANES)
    r = pl.cdiv(n, g)                                 # packed rows holding real data
    tile_r = min(rows_fit, _round_up(r, _SUBLANES))   # multiple of 8 sublanes
    num_tiles = pl.cdiv(r, tile_r)
    r_pad = num_tiles * tile_r
    n_pad = r_pad * g

    if n_pad != n:
        pad = ((0, n_pad - n), (0, 0))
        pred2d = jnp.pad(pred2d, pad)
        gt2d = jnp.pad(gt2d, pad)
    pred_packed = pred2d.reshape(r_pad, c)
    gt_packed = gt2d.reshape(r_pad, c)

    # Block-diagonal ones matrix: seg[i, j] = 1 iff lane i belongs to segment j.
    seg = (jnp.arange(c, dtype=jnp.int32)[:, None] // d
           == jnp.arange(g, dtype=jnp.int32)[None, :]).astype(jnp.float32)

    kernel = _make_kernel(n, g, tile_r)

    # TODO(synk): on v7x, split the row grid across the two TensorCores with a
    # leading "parallel" axis and per-core partial sums combined in the wrapper.
    out = pl.pallas_call(
        kernel,
        out_shape=jax.ShapeDtypeStruct((1, 1), jnp.float32),
        grid_spec=pltpu.PrefetchScalarGridSpec(
            num_scalar_prefetch=0,
            grid=(num_tiles,),
            in_specs=[
                pl.BlockSpec((tile_r, c), lambda i: (i, 0)),
                pl.BlockSpec((tile_r, c), lambda i: (i, 0)),
                pl.BlockSpec((c, g), lambda i: (0, 0)),   # resident, fetched once
            ],
            out_specs=pl.BlockSpec((1, 1), lambda i: (0, 0)),
            scratch_shapes=[pltpu.VMEM((1, 1), jnp.float32)],
        ),
        compiler_params=pltpu.CompilerParams(
            dimension_semantics=("arbitrary",),   # carries the accumulator
            vmem_limit_bytes=_VMEM_LIMIT_BYTES,
        ),
    )(pred_packed, gt_packed, seg)
    return out[0, 0].astype(vector_pred.dtype)


def _reference(vector_pred, vector_gt):
    x = vector_pred.astype(jnp.float32)
    y = vector_gt.astype(jnp.float32)
    xn = jnp.maximum(jnp.linalg.norm(x, axis=-1), _EPS)
    yn = jnp.maximum(jnp.linalg.norm(y, axis=-1), _EPS)
    cos = jnp.sum(x * y, axis=-1) / (xn * yn)
    return jnp.mean(1.0 - cos)


if __name__ == "__main__":
    key = jax.random.PRNGKey(0)
    jitted = jax.jit(cosine_similarity_loss)

    # (batch=2, seq=8, hidden=32): small-D path -> lane-dense packing (g = 4).
    k1, k2 = jax.random.split(key)
    pred = jax.random.normal(k1, (2, 8, 32), dtype=jnp.float32)
    gt = jax.random.normal(k2, (2, 8, 32), dtype=jnp.float32)
    loss = jax.block_until_ready(jitted(pred, gt))
    ref = _reference(pred, gt)
    assert jnp.allclose(loss, ref, atol=1e-4, rtol=1e-4), (loss, ref)

    # Row count not divisible by tile/packing (exercises masking) and a feature
    # dim that does not divide 128 (exercises the un-packed g = 1 path).
    k3, k4 = jax.random.split(k1)
    pred2 = jax.random.normal(k3, (3, 5, 48), dtype=jnp.float32)
    gt2 = jax.random.normal(k4, (3, 5, 48), dtype=jnp.float32)
    loss2 = jax.block_until_ready(jitted(pred2, gt2))
    ref2 = _reference(pred2, gt2)
    assert jnp.allclose(loss2, ref2, atol=1e-4, rtol=1e-4), (loss2, ref2)

    print("KERNEL_OK")
</pallas_src>

<mosaic_0001>
module attributes {stable_mosaic.version = 11 : i64} {
  func.func @kernel(%arg0: i32, %arg1: memref<8x128xf32, #tpu.memory_space<vmem>>, %arg2: memref<8x128xf32, #tpu.memory_space<vmem>>, %arg3: memref<128x4xf32, #tpu.memory_space<vmem>>, %arg4: memref<1x1xf32, #tpu.memory_space<vmem>>, %arg5: memref<1x1xf32, #tpu.memory_space<vmem>>) attributes {dimension_semantics = [#tpu.dimension_semantics<arbitrary>], iteration_bounds = array<i64: 1>, scalar_prefetch = 0 : i64, scratch_operands = 1 : i64, tpu.core_type = #tpu.core_type<tc>, window_params = [{transform_indices = @transform_0, window_bounds = array<i64: 8, 128>}, {transform_indices = @transform_1, window_bounds = array<i64: 8, 128>}, {pipeline_mode = #tpu.pipeline_mode<synchronous>, transform_indices = @transform_2, window_bounds = array<i64: 128, 4>}, {pipeline_mode = #tpu.pipeline_mode<synchronous>, transform_indices = @transform_3, window_bounds = array<i64: 1, 1>}]} {
    %c0_i32 = arith.constant 0 : i32
    %0 = arith.cmpi eq, %arg0, %c0_i32 : i32
    %1 = arith.extui %0 : i1 to i32
    %c0_i32_0 = arith.constant 0 : i32
    %2 = arith.cmpi ne, %1, %c0_i32_0 : i32
    scf.if %2 {
      %cst_19 = arith.constant 0.000000e+00 : f32
      %46 = vector.broadcast %cst_19 : f32 to vector<1x1xf32>
      %c0_20 = arith.constant 0 : index
      %c0_21 = arith.constant 0 : index
      %47 = vector.load %arg5[%c0_20, %c0_21] : memref<1x1xf32, #tpu.memory_space<vmem>>, vector<1x1xf32>
      tpu.vector_store %arg5[%c0_20, %c0_21], %46 {strides = array<i32>} : memref<1x1xf32, #tpu.memory_space<vmem>>, vector<1x1xf32>,
    } else {
    }
    %c0 = arith.constant 0 : index
    %c0_1 = arith.constant 0 : index
    %3 = vector.load %arg1[%c0, %c0_1] : memref<8x128xf32, #tpu.memory_space<vmem>>, vector<8x128xf32>
    %c0_2 = arith.constant 0 : index
    %c0_3 = arith.constant 0 : index
    %4 = vector.load %arg2[%c0_2, %c0_3] : memref<8x128xf32, #tpu.memory_space<vmem>>, vector<8x128xf32>
    %c0_4 = arith.constant 0 : index
    %c0_5 = arith.constant 0 : index
    %5 = vector.load %arg3[%c0_4, %c0_5] : memref<128x4xf32, #tpu.memory_space<vmem>>, vector<128x4xf32>
    %6 = arith.mulf %3, %4 : vector<8x128xf32>
    %cst = arith.constant dense<0.000000e+00> : vector<8x4xf32>
    %7 = tpu.matmul %6, %5, %cst {dimension_numbers = #tpu.dot_dimension_numbers<[1], [0], [0], [1], [0, 0, 1, 1], [], []>, precision = #tpu.contract_precision<fp32>} : vector<8x128xf32>, vector<128x4xf32>, vector<8x4xf32> -> vector<8x4xf32>
    %8 = arith.mulf %3, %3 : vector<8x128xf32>
    %cst_6 = arith.constant dense<0.000000e+00> : vector<8x4xf32>
    %9 = tpu.matmul %8, %5, %cst_6 {dimension_numbers = #tpu.dot_dimension_numbers<[1], [0], [0], [1], [0, 0, 1, 1], [], []>, precision = #tpu.contract_precision<fp32>} : vector<8x128xf32>, vector<128x4xf32>, vector<8x4xf32> -> vector<8x4xf32>
    %10 = arith.mulf %4, %4 : vector<8x128xf32>
    %cst_7 = arith.constant dense<0.000000e+00> : vector<8x4xf32>
    %11 = tpu.matmul %10, %5, %cst_7 {dimension_numbers = #tpu.dot_dimension_numbers<[1], [0], [0], [1], [0, 0, 1, 1], [], []>, precision = #tpu.contract_precision<fp32>} : vector<8x128xf32>, vector<128x4xf32>, vector<8x4xf32> -> vector<8x4xf32>
    %12 = math.sqrt %9 : vector<8x4xf32>
    %cst_8 = arith.constant 9.99999993E-9 : f32
    %13 = vector.broadcast %cst_8 : f32 to vector<8x4xf32>
    %14 = arith.maximumf %12, %13 : vector<8x4xf32>
    %15 = math.sqrt %11 : vector<8x4xf32>
    %cst_9 = arith.constant 9.99999993E-9 : f32
    %16 = vector.broadcast %cst_9 : f32 to vector<8x4xf32>
    %17 = arith.maximumf %15, %16 : vector<8x4xf32>
    %18 = arith.mulf %14, %17 : vector<8x4xf32>
    %19 = tpu.reciprocal %18 : vector<8x4xf32> -> vector<8x4xf32>
    %20 = arith.mulf %7, %19 : vector<8x4xf32>
    %21 = tpu.iota {dimensions = array<i32: 0>} : vector<8x4xi32>
    %22 = tpu.iota {dimensions = array<i32: 1>} : vector<8x4xi32>
    %c8_i32 = arith.constant 8 : i32
    %23 = arith.muli %arg0, %c8_i32 : i32
    %24 = vector.broadcast %23 : i32 to vector<8x4xi32>
    %25 = arith.addi %24, %21 : vector<8x4xi32>
    %c4_i32 = arith.constant 4 : i32
    %26 = vector.broadcast %c4_i32 : i32 to vector<8x4xi32>
    %27 = arith.muli %25, %26 : vector<8x4xi32>
    %28 = arith.addi %27, %22 : vector<8x4xi32>
    %c16_i32 = arith.constant 16 : i32
    %29 = vector.broadcast %c16_i32 : i32 to vector<8x4xi32>
    %30 = arith.cmpi slt, %28, %29 : vector<8x4xi32>
    %cst_10 = arith.constant 1.000000e+00 : f32
    %31 = vector.broadcast %cst_10 : f32 to vector<8x4xf32>
    %32 = arith.subf %31, %20 : vector<8x4xf32>
    %cst_11 = arith.constant 0.000000e+00 : f32
    %33 = vector.broadcast %cst_11 : f32 to vector<8x4xf32>
    %34 = arith.select %30, %32, %33 : vector<8x4xi1>, vector<8x4xf32>
    %c0_12 = arith.constant 0 : index
    %c0_13 = arith.constant 0 : index
    %35 = vector.load %arg5[%c0_12, %c0_13] : memref<1x1xf32, #tpu.memory_space<vmem>>, vector<1x1xf32>
    %36 = vector.shape_cast %34 : vector<8x4xf32> to vector<1x8x4xf32>
    %cst_14 = arith.constant dense<0.000000e+00> : vector<1xf32>
    %37 = vector.multi_reduction <add>, %36, %cst_14 [1, 2] : vector<1x8x4xf32> to vector<1xf32>
    %38 = vector.shape_cast %37 : vector<1xf32> to vector<1x1x1xf32>
    %39 = vector.extract %38[0, 0, 0] : f32 from vector<1x1x1xf32>
    %40 = vector.broadcast %39 : f32 to vector<1x1xf32>
    %41 = arith.addf %35, %40 : vector<1x1xf32>
    %c0_15 = arith.constant 0 : index
    %c0_16 = arith.constant 0 : index
    %42 = vector.load %arg5[%c0_15, %c0_16] : memref<1x1xf32, #tpu.memory_space<vmem>>, vector<1x1xf32>
    tpu.vector_store %arg5[%c0_15, %c0_16], %41 {strides = array<i32>} : memref<1x1xf32, #tpu.memory_space<vmem>>, vector<1x1xf32>,
    %c0_i32_17 = arith.constant 0 : i32
    %43 = arith.cmpi eq, %arg0, %c0_i32_17 : i32
    %44 = arith.extui %43 : i1 to i32
    %c0_i32_18 = arith.constant 0 : i32
    %45 = arith.cmpi ne, %44, %c0_i32_18 : i32
    scf.if %45 {
      %c0_19 = arith.constant 0 : index
      %c0_20 = arith.constant 0 : index
      %46 = vector.load %arg5[%c0_19, %c0_20] : memref<1x1xf32, #tpu.memory_space<vmem>>, vector<1x1xf32>
      %cst_21 = arith.constant 6.250000e-02 : f32
      %47 = vector.broadcast %cst_21 : f32 to vector<1x1xf32>
      %48 = arith.mulf %46, %47 : vector<1x1xf32>
      %c0_22 = arith.constant 0 : index
      %c0_23 = arith.constant 0 : index
      %49 = vector.load %arg4[%c0_22, %c0_23] : memref<1x1xf32, #tpu.memory_space<vmem>>, vector<1x1xf32>
      tpu.vector_store %arg4[%c0_22, %c0_23], %48 {strides = array<i32>} : memref<1x1xf32, #tpu.memory_space<vmem>>, vector<1x1xf32>,
    } else {
    }
    return
  }
  func.func @transform_0(%arg0: i32) -> (i32, i32) {
    %c0_i32 = arith.constant 0 : i32
    %c0_i32_0 = arith.constant 0 : i32
    return %arg0, %c0_i32 : i32, i32
  }
  func.func @transform_1(%arg0: i32) -> (i32, i32) {
    %c0_i32 = arith.constant 0 : i32
    %c0_i32_0 = arith.constant 0 : i32
    return %arg0, %c0_i32 : i32, i32
  }
  func.func @transform_2(%arg0: i32) -> (i32, i32) {
    %c0_i32 = arith.constant 0 : i32
    %c0_i32_0 = arith.constant 0 : i32
    %c0_i32_1 = arith.constant 0 : i32
    return %c0_i32, %c0_i32_0 : i32, i32
  }
  func.func @transform_3(%arg0: i32) -> (i32, i32) {
    %c0_i32 = arith.constant 0 : i32
    %c0_i32_0 = arith.constant 0 : i32
    %c0_i32_1 = arith.constant 0 : i32
    return %c0_i32, %c0_i32_0 : i32, i32
  }
}

</mosaic_0001>

<bundles_post_ra>
// kernel: cosine_similarity_loss.1
= control target key start
LH: loop header
LB: loop body
LE: loop exit
PB: predicated region body
PF: predicated region fallthrough
CT: control target
= control target key end

     0   :  { %s1786_s0 = inlined_call_operand.vmem [shape: f32[8,128], index: 0, kind: input, shape index: {}]   ;;  %s1787_s1 = inlined_call_operand.vmem [shape: f32[8,128], index: 1, kind: input, shape index: {}]   ;;  %s1788_s2 = inlined_call_operand.vmem [shape: f32[128,4], index: 2, kind: input, shape index: {}]   ;;  %s1789_s3 = inlined_call_operand.hbm [shape: f32[1,1], index: 3, kind: output, shape index: {}]  }
   0x1   :  { %v38_v0 = vld [vmem:[%s1788_s2 + $0x78] sm:$0xff]  ;;  %v37_v1 = vld [vmem:[%s1788_s2 + $0x70] sm:$0xff]  ;;  %v36_v2 = vld [vmem:[%s1788_s2 + $0x68] sm:$0xff] }
   0x2   :  { %v1224_v3 = vand.u32 4294901760, %v38_v0  ;;  %v1226_v4 = vand.u32 4294901760, %v37_v1  ;;  %v1228_v5 = vand.u32 4294901760, %v36_v2  ;;  %v35_v6 = vld [vmem:[%s1788_s2 + $0x60] sm:$0xff]  ;;  %v34_v7 = vld [vmem:[%s1788_s2 + $0x58] sm:$0xff]  ;;  %v33_v8 = vld [vmem:[%s1788_s2 + $0x50] sm:$0xff] }
   0x3   :  { %v1239_v9 = vand.u32 4294901760, %v35_v6  ;;  %v1241_v10 = vand.u32 4294901760, %v34_v7  ;;  %v1243_v11 = vand.u32 4294901760, %v33_v8  ;;  %v32_v12 = vld [vmem:[%s1788_s2 + $0x48] sm:$0xff]  ;;  %v31_v13 = vld [vmem:[%s1788_s2 + $0x40] sm:$0xff]  ;;  %v30_v18 = vld [vmem:[%s1788_s2 + $0x38] sm:$0xff] }
   0x4   :  { %41 = vmatpush.msra.mxu0 %v1224_v3  ;;  %v1253_v14 = vsub.f32 %v38_v0, %v1224_v3  ;;  %v1256_v15 = vsub.f32 %v37_v1, %v1226_v4  ;;  %v1259_v16 = vsub.f32 %v36_v2, %v1228_v5  ;;  %v1261_v17 = vand.u32 4294901760, %v32_v12  ;;  %237 = vmatpush.msra.mxu3 %v1224_v3  ;;  %v29_v26 = vld [vmem:[%s1788_s2 + $0x30] sm:$0xff] }
   0x5   :  { %v1268_v19 = vsub.f32 %v35_v6, %v1239_v9  ;;  %v1271_v20 = vsub.f32 %v34_v7, %v1241_v10  ;;  %v1274_v21 = vsub.f32 %v33_v8, %v1243_v11  ;;  %v1287_v25 = vand.u32 4294901760, %v31_v13 }
   0x6   :  { %43 = vmatpush.msra.mxu0 %v1226_v4  ;;  %v1278_v22 = vand.u32 4294901760, %v1253_v14  ;;  %v1281_v23 = vand.u32 4294901760, %v1256_v15  ;;  %v1284_v24 = vand.u32 4294901760, %v1259_v16  ;;  %184 = vmatpush.msra.mxu2 %v1253_v14  ;;  %v1296_v28 = vand.u32 4294901760, %v30_v18 }
   0x7   :  { %v1293_v27 = vand.u32 4294901760, %v1268_v19  ;;  %239 = vmatpush.msra.mxu3 %v1226_v4  ;;  %v1299_v29 = vsub.f32 %v32_v12, %v1261_v17 }
   0x9   :  { %1806 = vst [vmem:[#allocation6_spill] sm:$0xff] %v1293_v27 }
   0xa   :  { %8 = vsyncpa [#allocation4], 0  ;;  %45 = vmatpush.msra.mxu0 %v1228_v5  ;;  %v84_v30 = vsub.f32 %v1253_v14, %v1278_v22  ;;  %v90_v31 = vsub.f32 %v1256_v15, %v1281_v23  ;;  %v96_v32 = vsub.f32 %v1259_v16, %v1284_v24  ;;  %v1309_v33 = vand.u32 4294901760, %v1271_v20  ;;  %187 = vmatpush.msra.mxu2 %v1256_v15  ;;  %v28_v36 = vld [vmem:[%s1788_s2 + $0x28] sm:$0xff]  ;;  %v27_v42 = vld [vmem:[%s1788_s2 + $0x20] sm:$0xff]  ;;  %s1148_s23 = sshll.u32 %s1789_s3, 4  ;;  %s1149_s23 = int_to_ptr.hbm [resolvable:$true] %s1148_s23 }
   0xb   :  { %v1313_v34 = vand.u32 4294901760, %v1274_v21  ;;  %241 = vmatpush.msra.mxu3 %v1228_v5  ;;  %v1316_v35 = vand.u32 4294901760, %v29_v26  ;;  %v102_v39 = vsub.f32 %v1268_v19, %v1293_v27  ;;  %v1330_v40 = vsub.f32 %v31_v13, %v1287_v25  ;;  %v26_v48 = vld [vmem:[%s1788_s2 + $0x18] sm:$0xff]  ;;  %v25_v54 = vld [vmem:[%s1788_s2 + $0x10] sm:$0xff]  ;;  %v24_v60 = vld [vmem:[%s1788_s2 + $0x8] sm:$0xff] }
   0xc   :  { %1807 = vst [vmem:[#allocation7_spill] sm:$0xff] %v1309_v33  ;;  %v1321_v37 = vand.u32 4294901760, %v84_v30  ;;  %47 = vmatpush.msra.mxu0 %v1239_v9  ;;  %v1324_v38 = vand.u32 4294901760, %v90_v31  ;;  %190 = vmatpush.msra.mxu2 %v1259_v16  ;;  %v1333_v41 = vand.u32 4294901760, %v1299_v29  ;;  %v1341_v43 = vand.u32 4294901760, %v96_v32  ;;  %v23_v1 = vld [vmem:[%s1788_s2] sm:$0xff] }
   0xd   :  { %1808 = vst [vmem:[#allocation8_spill] sm:$0xff] %v1313_v34  ;;  %243 = vmatpush.msra.mxu3 %v1239_v9  ;;  %v108_v44 = vsub.f32 %v1271_v20, %v1309_v33  ;;  %v1345_v45 = vand.u32 4294901760, %v28_v36  ;;  %v1348_v46 = vsub.f32 %v30_v18, %v1296_v28  ;;  %v114_v47 = vsub.f32 %v1274_v21, %v1313_v34 }
   0xe   :  { %86 = vmatpush.msra.mxu1 %v1321_v37  ;;  %49 = vmatpush.msra.mxu0 %v1241_v10  ;;  %v1359_v49 = vand.u32 4294901760, %v102_v39  ;;  %v1362_v50 = vand.u32 4294901760, %v1330_v40  ;;  %v1364_v51 = vand.u32 4294901760, %v27_v42  ;;  %v1367_v52 = vsub.f32 %v29_v26, %v1316_v35 }
   0xf   :  { %193 = vmatpush.msra.mxu2 %v1268_v19  ;;  %245 = vmatpush.msra.mxu3 %v1241_v10  ;;  %v120_v53 = vsub.f32 %v1299_v29, %v1333_v41  ;;  %v1378_v55 = vand.u32 4294901760, %v108_v44  ;;  %v1381_v56 = vand.u32 4294901760, %v1348_v46  ;;  %v1383_v57 = vand.u32 4294901760, %v26_v48 }
  0x10   :  { %92 = vmatpush.msra.mxu1 %v1324_v38  ;;  %51 = vmatpush.msra.mxu0 %v1243_v11  ;;  %1809 = vst [vmem:[#allocation9_spill] sm:$0xff] %v1362_v50  ;;  %v1386_v58 = vsub.f32 %v28_v36, %v1345_v45  ;;  %v1388_v59 = vand.u32 4294901760, %v114_v47  ;;  %v126_v61 = vsub.f32 %v1330_v40, %v1362_v50  ;;  %v1400_v62 = vand.u32 4294901760, %v1367_v52 }
  0x11   :  { %1810 = vst [vmem:[#allocation10_spill] sm:$0xff] %v1367_v52  ;;  %196 = vmatpush.msra.mxu2 %v1271_v20  ;;  %247 = vmatpush.msra.mxu3 %v1243_v11  ;;  %v1402_v63 = vand.u32 4294901760, %v25_v54  ;;  %v1405_v0 = vsub.f32 %v27_v42, %v1364_v51  ;;  %v1410_v2 = vand.u32 4294901760, %v120_v53  ;;  %v132_v6 = vsub.f32 %v1348_v46, %v1381_v56 }
  0x12   :  { %98 = vmatpush.msra.mxu1 %v1341_v43  ;;  %53 = vmatpush.msra.mxu0 %v1261_v17  ;;  %1811 = vst [vmem:[#allocation11_spill] sm:$0xff] %v1386_v58  ;;  %v1419_v7 = vand.u32 4294901760, %v1386_v58  ;;  %v1421_v8 = vand.u32 4294901760, %v24_v60  ;;  %v1424_v12 = vsub.f32 %v26_v48, %v1383_v57  ;;  %v1428_v13 = vand.u32 4294901760, %v23_v1 }
  0x13   :  { %1812 = vst [vmem:[#allocation12_spill] sm:$0xff] %v1388_v59  ;;  %199 = vmatpush.msra.mxu2 %v1274_v21  ;;  %249 = vmatpush.msra.mxu3 %v1261_v17  ;;  %v1432_v18 = vand.u32 4294901760, %v126_v61  ;;  %v138_v26 = vsub.f32 %v1367_v52, %v1400_v62  ;;  %v1437_v30 = vand.u32 4294901760, %v1405_v0  ;;  %v1440_v31 = vsub.f32 %v25_v54, %v1402_v63 }
  0x14   :  { %104 = vmatpush.msra.mxu1 %v1359_v49  ;;  %55 = vmatpush.msra.mxu0 %v1287_v25  ;;  %1813 = vst [vmem:[#allocation13_spill] sm:$0xff] %v1405_v0  ;;  %v1446_v32 = vand.u32 4294901760, %v132_v6  ;;  %v144_v36 = vsub.f32 %v1386_v58, %v1419_v7  ;;  %v1451_v39 = vand.u32 4294901760, %v1424_v12  ;;  %v1454_v42 = vsub.f32 %v24_v60, %v1421_v8 }
  0x15   :  { %202 = vmatpush.msra.mxu2 %v1299_v29  ;;  %251 = vmatpush.msra.mxu3 %v1287_v25  ;;  %1814 = vst [vmem:[#allocation14_spill] sm:$0xff] %v1424_v12  ;;  %v1460_v44 = vand.u32 4294901760, %v138_v26  ;;  %v150_v47 = vsub.f32 %v1405_v0, %v1437_v30  ;;  %v1465_v48 = vand.u32 4294901760, %v1440_v31  ;;  %v1468_v53 = vsub.f32 %v23_v1, %v1428_v13 }
  0x16   :  { %110 = vmatpush.msra.mxu1 %v1378_v55  ;;  %57 = vmatpush.msra.mxu0 %v1296_v28  ;;  %1815 = vst [vmem:[#allocation15_spill] sm:$0xff] %v1440_v31  ;;  %v1474_v54 = vand.u32 4294901760, %v144_v36  ;;  %v156_v60 = vsub.f32 %v1424_v12, %v1451_v39  ;;  %v1479_v61 = vand.u32 4294901760, %v1454_v42  ;;  %vm1120_vm9 = vcmask 31744  }
  0x17   :  { %205 = vmatpush.msra.mxu2 %v1330_v40  ;;  %253 = vmatpush.msra.mxu3 %v1296_v28  ;;  %v1485_v1 = vand.u32 4294901760, %v150_v47  ;;  %v162_v6 = vsub.f32 %v1440_v31, %v1465_v48  ;;  %v1490_v26 = vand.u32 4294901760, %v1468_v53  ;;  %vm19_vm10 = vcmask 0  }
  0x18   :  { %116 = vmatpush.msra.mxu1 %v1388_v59  ;;  %59 = vmatpush.msra.mxu0 %v1316_v35  ;;  %v1496_v36 = vand.u32 4294901760, %v156_v60  ;;  %v168_v47 = vsub.f32 %v1454_v42, %v1479_v61 }
  0x19   :  { %208 = vmatpush.msra.mxu2 %v1348_v46  ;;  %255 = vmatpush.msra.mxu3 %v1316_v35  ;;  %v1514_v60 = vand.u32 4294901760, %v162_v6 }
  0x1a   :  { %122 = vmatpush.msra.mxu1 %v1410_v2  ;;  %61 = vmatpush.msra.mxu0 %v1345_v45 }
  0x1b   :  { %211 = vmatpush.msra.mxu2 %v1367_v52  ;;  %257 = vmatpush.msra.mxu3 %v1345_v45 }
  0x1c   :  { %128 = vmatpush.msra.mxu1 %v1432_v18  ;;  %63 = vmatpush.msra.mxu0 %v1364_v51 }
  0x1d   :  { %214 = vmatpush.msra.mxu2 %v1386_v58  ;;  %259 = vmatpush.msra.mxu3 %v1364_v51  ;;  %v1521_v58 = vand.u32 4294901760, %v168_v47 }
  0x1e   :  { %134 = vmatpush.msra.mxu1 %v1446_v32  ;;  %65 = vmatpush.msra.mxu0 %v1383_v57 }
  0x1f   :  { %217 = vmatpush.msra.mxu2 %v1405_v0  ;;  %261 = vmatpush.msra.mxu3 %v1383_v57  ;;  %v1505_v0 = vld [vmem:[%s1786_s0] sm:$0xff] }
  0x20   :  { %140 = vmatpush.msra.mxu1 %v1460_v44  ;;  %67 = vmatpush.msra.mxu0 %v1402_v63 }
  0x21   :  { %220 = vmatpush.msra.mxu2 %v1424_v12  ;;  %263 = vmatpush.msra.mxu3 %v1402_v63  ;;  %v1510_v12 = vld [vmem:[%s1787_s1] sm:$0xff]  ;;  %s1194_s1 = smov [#allocation3]  }
  0x22   :  { %146 = vmatpush.msra.mxu1 %v1474_v54  ;;  %69 = vmatpush.msra.mxu0 %v1421_v8  ;;  %1816 = vst [vmem:[#allocation16_spill] sm:$0xff] %v1510_v12  ;;  %v39_v52 = vmul.f32 %v1510_v12, %v1505_v0  ;;  %s1146_s20 = sshll.u32 %s1194_s1, 4  ;;  %s1147_s20 = int_to_ptr.vmem [resolvable:$true] %s1146_s20 }
  0x23   :  { %223 = vmatpush.msra.mxu2 %v1440_v31  ;;  %265 = vmatpush.msra.mxu3 %v1421_v8  ;;  %v174_v31 = vsub.f32 %v1468_v53, %v1490_v26 }
  0x24   :  { %152 = vmatpush.msra.mxu1 %v1485_v1  ;;  %71 = vmatpush.msra.mxu0 %v1428_v13  ;;  %v1536_v47 = vand.u32 4294901760, %v39_v52 }
  0x25   :  { %226 = vmatpush.msra.mxu2 %v1454_v42  ;;  %267 = vmatpush.msra.mxu3 %v1428_v13  ;;  %v1529_v6 = vand.u32 4294901760, %v174_v31 }
  0x26   :  { %278 = vmatpush.msrb.mxu0 %v1278_v22  ;;  %158 = vmatpush.msra.mxu1 %v1496_v36  ;;  %v73_v31 = vsub.f32 %v39_v52, %v1536_v47 }
  0x27   :  { %229 = vmatpush.msra.mxu2 %v1468_v53  ;;  %428 = vmatpush.msrb.mxu3 %v1321_v37 }
  0x28   :  { %282 = vmatpush.msrb.mxu0 %v1281_v23  ;;  %164 = vmatpush.msra.mxu1 %v1514_v60  ;;  %v74_v12 = vand.u32 4294901760, %v73_v31 }
  0x29   :  { %383 = vmatpush.msrb.mxu2 %v1224_v3  ;;  %434 = vmatpush.msrb.mxu3 %v1324_v38 }
  0x2a   :  { %286 = vmatpush.msrb.mxu0 %v1284_v24  ;;  %170 = vmatpush.msra.mxu1 %v1521_v58  ;;  %v75_v52 = vsub.f32 %v73_v31, %v74_v12 }
  0x2b   :  { %385 = vmatpush.msrb.mxu2 %v1226_v4  ;;  %440 = vmatpush.msrb.mxu3 %v1341_v43 }
  0x2c   :  { %290 = vmatpush.msrb.mxu0 %v1293_v27  ;;  %176 = vmatpush.msra.mxu1 %v1529_v6 }
  0x2d   :  { %387 = vmatpush.msrb.mxu2 %v1228_v5  ;;  %446 = vmatpush.msrb.mxu3 %v1359_v49 }
  0x2e   :  { %345 = vmatpush.msrb.mxu1 %v1224_v3  ;;  %294 = vmatpush.msrb.mxu0 %v1309_v33 }
  0x2f   :  { %389 = vmatpush.msrb.mxu2 %v1239_v9  ;;  %452 = vmatpush.msrb.mxu3 %v1378_v55 }
  0x30   :  { %347 = vmatpush.msrb.mxu1 %v1226_v4  ;;  %298 = vmatpush.msrb.mxu0 %v1313_v34 }
  0x31   :  { %391 = vmatpush.msrb.mxu2 %v1241_v10  ;;  %458 = vmatpush.msrb.mxu3 %v1388_v59  ;;  %v76_v59 = vand.u32 4294901760, %v75_v52  ;;  %v1819_v52 = vld [vmem:[#allocation13_spill] sm:$0xff] }
  0x32   :  { %349 = vmatpush.msrb.mxu1 %v1228_v5  ;;  %302 = vmatpush.msrb.mxu0 %v1333_v41 }
  0x33   :  { %393 = vmatpush.msrb.mxu2 %v1243_v11  ;;  %464 = vmatpush.msrb.mxu3 %v1410_v2 }
  0x34   :  { %351 = vmatpush.msrb.mxu1 %v1239_v9  ;;  %306 = vmatpush.msrb.mxu0 %v1362_v50 }
  0x35   :  { %395 = vmatpush.msrb.mxu2 %v1261_v17  ;;  %470 = vmatpush.msrb.mxu3 %v1432_v18 }
  0x36   :  { %353 = vmatpush.msrb.mxu1 %v1241_v10  ;;  %310 = vmatpush.msrb.mxu0 %v1381_v56 }
  0x37   :  { %397 = vmatpush.msrb.mxu2 %v1287_v25  ;;  %476 = vmatpush.msrb.mxu3 %v1446_v32 }
  0x38   :  { %355 = vmatpush.msrb.mxu1 %v1243_v11  ;;  %314 = vmatpush.msrb.mxu0 %v1400_v62 }
  0x39   :  { %399 = vmatpush.msrb.mxu2 %v1296_v28  ;;  %482 = vmatpush.msrb.mxu3 %v1460_v44 }
  0x3a   :  { %357 = vmatpush.msrb.mxu1 %v1261_v17  ;;  %318 = vmatpush.msrb.mxu0 %v1419_v7 }
  0x3b   :  { %401 = vmatpush.msrb.mxu2 %v1316_v35  ;;  %77 = vmatmul.f32.vlgmr.msra.gmra.mxu0 %v76_v59  ;;  %v381_v59 = vmul.f32 %v1505_v0, %v1505_v0  ;;  %v1817_v0 = vld [vmem:[#allocation10_spill] sm:$0xff] }
  0x3c   :  { %359 = vmatpush.msrb.mxu1 %v1287_v25  ;;  %322 = vmatpush.msrb.mxu0 %v1437_v30 }
  0x3d   :  { %232 = vmatmul.f32.vlgmr.msra.gmra.mxu2 %v73_v31  ;;  %271 = vmatmul.f32.vlgmr.msra.gmra.mxu3 %v74_v12  ;;  %v1616_v12 = vand.u32 4294901760, %v381_v59  ;;  %v1818_v31 = vld [vmem:[#allocation11_spill] sm:$0xff] }
  0x3e   :  { %361 = vmatpush.msrb.mxu1 %v1296_v28  ;;  %326 = vmatpush.msrb.mxu0 %v1451_v39 }
  0x3f   :  { %403 = vmatpush.msrb.mxu2 %v1345_v45  ;;  %488 = vmatpush.msrb.mxu3 %v1474_v54 }
  0x40   :  { %363 = vmatpush.msrb.mxu1 %v1316_v35  ;;  %330 = vmatpush.msrb.mxu0 %v1465_v48 }
  0x41   :  { %405 = vmatpush.msrb.mxu2 %v1364_v51  ;;  %178 = vmatmul.f32.vlgmr.msra.gmra.mxu1 %v1536_v47 }
  0x42   :  { %365 = vmatpush.msrb.mxu1 %v1345_v45  ;;  %334 = vmatpush.msrb.mxu0 %v1479_v61 }
  0x43   :  { %407 = vmatpush.msrb.mxu2 %v1383_v57  ;;  %494 = vmatpush.msrb.mxu3 %v1485_v1 }
  0x44   :  { %367 = vmatpush.msrb.mxu1 %v1364_v51  ;;  %338 = vmatpush.msrb.mxu0 %v1490_v26 }
  0x45   :  { %409 = vmatpush.msrb.mxu2 %v1402_v63  ;;  %500 = vmatpush.msrb.mxu3 %v1496_v36 }
  0x46   :  { %526 = vmatpush.msra.mxu0 %v1253_v14  ;;  %369 = vmatpush.msrb.mxu1 %v1383_v57 }
  0x47   :  { %411 = vmatpush.msrb.mxu2 %v1421_v8  ;;  %506 = vmatpush.msrb.mxu3 %v1514_v60 }
  0x48   :  { %529 = vmatpush.msra.mxu0 %v1256_v15  ;;  %371 = vmatpush.msrb.mxu1 %v1402_v63 }
  0x49   :  { %413 = vmatpush.msrb.mxu2 %v1428_v13  ;;  %340 = vmatmul.f32.vlgmr.msrb.gmra.mxu0 %v1536_v47 }
  0x4a   :  { %532 = vmatpush.msra.mxu0 %v1259_v16  ;;  %373 = vmatpush.msrb.mxu1 %v1421_v8 }
  0x4b   :  { %512 = vmatpush.msrb.mxu3 %v1521_v58  ;;  %620 = vmatpush.msra.mxu2 %v1278_v22 }
  0x4c   :  { %535 = vmatpush.msra.mxu0 %v1268_v19  ;;  %375 = vmatpush.msrb.mxu1 %v1428_v13 }
  0x4d   :  { %377 = vmatmul.f32.vlgmr.msrb.gmra.mxu1 %v1536_v47  ;;  %518 = vmatpush.msrb.mxu3 %v1529_v6  ;;  %v415_v47 = vsub.f32 %v381_v59, %v1616_v12  ;;  %v1820_v59 = vld [vmem:[#allocation14_spill] sm:$0xff] }
  0x4e   :  { %579 = vmatpush.msra.mxu1 %v1224_v3  ;;  %538 = vmatpush.msra.mxu0 %v1271_v20 }
  0x4f   :  { %624 = vmatpush.msra.mxu2 %v1281_v23  ;;  %687 = vmatpush.msra.mxu3 %v1224_v3 }
  0x50   :  { %581 = vmatpush.msra.mxu1 %v1226_v4  ;;  %541 = vmatpush.msra.mxu0 %v1274_v21 }
  0x51   :  { %628 = vmatpush.msra.mxu2 %v1284_v24  ;;  %689 = vmatpush.msra.mxu3 %v1226_v4 }
  0x52   :  { %583 = vmatpush.msra.mxu1 %v1228_v5  ;;  %544 = vmatpush.msra.mxu0 %v1299_v29 }
  0x53   :  { %632 = vmatpush.msra.mxu2 %v1293_v27  ;;  %691 = vmatpush.msra.mxu3 %v1228_v5  ;;  %v416_v27 = vand.u32 4294901760, %v415_v47 }
  0x54   :  { %585 = vmatpush.msra.mxu1 %v1239_v9  ;;  %547 = vmatpush.msra.mxu0 %v1330_v40 }
  0x55   :  { %636 = vmatpush.msra.mxu2 %v1309_v33  ;;  %693 = vmatpush.msra.mxu3 %v1239_v9  ;;  %v417_v33 = vsub.f32 %v415_v47, %v416_v27 }
  0x56   :  { %587 = vmatpush.msra.mxu1 %v1241_v10  ;;  %550 = vmatpush.msra.mxu0 %v1348_v46 }
  0x57   :  { %640 = vmatpush.msra.mxu2 %v1313_v34  ;;  %695 = vmatpush.msra.mxu3 %v1241_v10  ;;  %v1821_v34 = vld [vmem:[#allocation15_spill] sm:$0xff] }
  0x58   :  { %589 = vmatpush.msra.mxu1 %v1243_v11  ;;  %553 = vmatpush.msra.mxu0 %v1817_v0 }
  0x59   :  { %644 = vmatpush.msra.mxu2 %v1333_v41  ;;  %697 = vmatpush.msra.mxu3 %v1243_v11 }
  0x5a   :  { %591 = vmatpush.msra.mxu1 %v1261_v17  ;;  %556 = vmatpush.msra.mxu0 %v1818_v31 }
  0x5b   :  { %648 = vmatpush.msra.mxu2 %v1362_v50  ;;  %699 = vmatpush.msra.mxu3 %v1261_v17  ;;  %v418_v50 = vand.u32 4294901760, %v417_v33  ;;  %v1822_v33 = vld [vmem:[#allocation12_spill] sm:$0xff] }
  0x5c   :  { %593 = vmatpush.msra.mxu1 %v1287_v25  ;;  %559 = vmatpush.msra.mxu0 %v1819_v52 }
  0x5d   :  { %652 = vmatpush.msra.mxu2 %v1381_v56  ;;  %701 = vmatpush.msra.mxu3 %v1287_v25 }
  0x5e   :  { %595 = vmatpush.msra.mxu1 %v1296_v28  ;;  %562 = vmatpush.msra.mxu0 %v1820_v59 }
  0x5f   :  { %656 = vmatpush.msra.mxu2 %v1400_v62  ;;  %703 = vmatpush.msra.mxu3 %v1296_v28 }
  0x60   :  { %597 = vmatpush.msra.mxu1 %v1316_v35  ;;  %565 = vmatpush.msra.mxu0 %v1821_v34 }
  0x61   :  { %660 = vmatpush.msra.mxu2 %v1419_v7  ;;  %705 = vmatpush.msra.mxu3 %v1316_v35 }
  0x62   :  { %599 = vmatpush.msra.mxu1 %v1345_v45  ;;  %568 = vmatpush.msra.mxu0 %v1454_v42 }
  0x63   :  { %664 = vmatpush.msra.mxu2 %v1437_v30  ;;  %707 = vmatpush.msra.mxu3 %v1345_v45 }
  0x64   :  { %601 = vmatpush.msra.mxu1 %v1364_v51  ;;  %571 = vmatpush.msra.mxu0 %v1468_v53 }
  0x65   :  { %419 = vmatmul.f32.vlgmr.msrb.gmra.mxu2 %v418_v50  ;;  %709 = vmatpush.msra.mxu3 %v1364_v51 }
  0x66   :  { %603 = vmatpush.msra.mxu1 %v1383_v57  ;;  %725 = vmatpush.msrb.mxu0 %v1224_v3 }
  0x67   :  { %668 = vmatpush.msra.mxu2 %v1451_v39  ;;  %520 = vmatmul.f32.vlgmr.msrb.gmra.mxu3 %v1616_v12 }
  0x68   :  { %605 = vmatpush.msra.mxu1 %v1402_v63  ;;  %727 = vmatpush.msrb.mxu0 %v1226_v4 }
  0x69   :  { %672 = vmatpush.msra.mxu2 %v1465_v48  ;;  %711 = vmatpush.msra.mxu3 %v1383_v57 }
  0x6a   :  { %607 = vmatpush.msra.mxu1 %v1421_v8  ;;  %729 = vmatpush.msrb.mxu0 %v1228_v5 }
  0x6b   :  { %676 = vmatpush.msra.mxu2 %v1479_v61  ;;  %713 = vmatpush.msra.mxu3 %v1402_v63 }
  0x6c   :  { %609 = vmatpush.msra.mxu1 %v1428_v13  ;;  %731 = vmatpush.msrb.mxu0 %v1239_v9 }
  0x6d   :  { %680 = vmatpush.msra.mxu2 %v1490_v26  ;;  %715 = vmatpush.msra.mxu3 %v1421_v8 }
  0x6e   :  { %770 = vmatpush.msrb.mxu1 %v1321_v37  ;;  %733 = vmatpush.msrb.mxu0 %v1241_v10 }
  0x6f   :  { %682 = vmatmul.f32.vlgmr.msra.gmra.mxu2 %v1616_v12  ;;  %717 = vmatpush.msra.mxu3 %v1428_v13 }
  0x70   :  { %776 = vmatpush.msrb.mxu1 %v1324_v38  ;;  %735 = vmatpush.msrb.mxu0 %v1243_v11 }
  0x71   :  { %574 = vmatmul.f32.vlgmr.msra.gmra.mxu0 %v415_v47  ;;  %719 = vmatmul.f32.vlgmr.msra.gmra.mxu3 %v1616_v12 }
  0x72   :  { %782 = vmatpush.msrb.mxu1 %v1341_v43  ;;  %737 = vmatpush.msrb.mxu0 %v1261_v17 }
  0x73   :  { %613 = vmatmul.f32.vlgmr.msra.gmra.mxu1 %v416_v27  ;;  %868 = vmatpush.msrb.mxu2 %v1253_v14  ;;  %v1823_v14 = vld [vmem:[#allocation16_spill] sm:$0xff] }
  0x74   :  { %788 = vmatpush.msrb.mxu1 %v1359_v49  ;;  %739 = vmatpush.msrb.mxu0 %v1287_v25 }
  0x75   :  { %871 = vmatpush.msrb.mxu2 %v1256_v15  ;;  %921 = vmatpush.msrb.mxu3 %v1224_v3  ;;  %v723_v15 = vmul.f32 %v1823_v14, %v1823_v14 }
  0x76   :  { %794 = vmatpush.msrb.mxu1 %v1378_v55  ;;  %741 = vmatpush.msrb.mxu0 %v1296_v28 }
  0x77   :  { %874 = vmatpush.msrb.mxu2 %v1259_v16  ;;  %923 = vmatpush.msrb.mxu3 %v1226_v4  ;;  %v1716_v16 = vand.u32 4294901760, %v723_v15 }
  0x78   :  { %800 = vmatpush.msrb.mxu1 %v1822_v33  ;;  %743 = vmatpush.msrb.mxu0 %v1316_v35 }
  0x79   :  { %877 = vmatpush.msrb.mxu2 %v1268_v19  ;;  %925 = vmatpush.msrb.mxu3 %v1228_v5  ;;  %v757_v19 = vsub.f32 %v723_v15, %v1716_v16 }
  0x7a   :  { %806 = vmatpush.msrb.mxu1 %v1410_v2  ;;  %745 = vmatpush.msrb.mxu0 %v1345_v45 }
  0x7b   :  { %880 = vmatpush.msrb.mxu2 %v1271_v20  ;;  %927 = vmatpush.msrb.mxu3 %v1239_v9  ;;  %v758_v20 = vand.u32 4294901760, %v757_v19 }
  0x7c   :  { %812 = vmatpush.msrb.mxu1 %v1432_v18  ;;  %747 = vmatpush.msrb.mxu0 %v1364_v51 }
  0x7d   :  { %883 = vmatpush.msrb.mxu2 %v1274_v21  ;;  %929 = vmatpush.msrb.mxu3 %v1241_v10  ;;  %v1824_v21 = vld [vmem:[#allocation6_spill] sm:$0xff] }
  0x7e   :  { %818 = vmatpush.msrb.mxu1 %v1446_v32  ;;  %749 = vmatpush.msrb.mxu0 %v1383_v57 }
  0x7f   :  { %886 = vmatpush.msrb.mxu2 %v1299_v29  ;;  %931 = vmatpush.msrb.mxu3 %v1243_v11 }
  0x80   :  { %824 = vmatpush.msrb.mxu1 %v1460_v44  ;;  %751 = vmatpush.msrb.mxu0 %v1402_v63 }
  0x81   :  { %889 = vmatpush.msrb.mxu2 %v1330_v40  ;;  %933 = vmatpush.msrb.mxu3 %v1261_v17 }
  0x82   :  { %830 = vmatpush.msrb.mxu1 %v1474_v54  ;;  %753 = vmatpush.msrb.mxu0 %v1421_v8 }
  0x83   :  { %892 = vmatpush.msrb.mxu2 %v1348_v46  ;;  %935 = vmatpush.msrb.mxu3 %v1287_v25 }
  0x84   :  { %836 = vmatpush.msrb.mxu1 %v1485_v1  ;;  %755 = vmatpush.msrb.mxu0 %v1428_v13 }
  0x85   :  { %895 = vmatpush.msrb.mxu2 %v1817_v0  ;;  %937 = vmatpush.msrb.mxu3 %v1296_v28 }
  0x86   :  { %842 = vmatpush.msrb.mxu1 %v1496_v36  ;;  %962 = vmatpush.msra.mxu0 %v1278_v22  ;;  %v1825_v22 = vld [vmem:[#allocation7_spill] sm:$0xff] }
  0x87   :  { %898 = vmatpush.msrb.mxu2 %v1818_v31  ;;  %939 = vmatpush.msrb.mxu3 %v1316_v35 }
  0x88   :  { %848 = vmatpush.msrb.mxu1 %v1514_v60  ;;  %966 = vmatpush.msra.mxu0 %v1281_v23  ;;  %v1826_v23 = vld [vmem:[#allocation8_spill] sm:$0xff] }
  0x89   :  { %901 = vmatpush.msrb.mxu2 %v1819_v52  ;;  %941 = vmatpush.msrb.mxu3 %v1345_v45 }
  0x8a   :  { %854 = vmatpush.msrb.mxu1 %v1521_v58  ;;  %970 = vmatpush.msra.mxu0 %v1284_v24 }
  0x8b   :  { %904 = vmatpush.msrb.mxu2 %v1820_v59  ;;  %943 = vmatpush.msrb.mxu3 %v1364_v51 }
  0x8c   :  { %860 = vmatpush.msrb.mxu1 %v1529_v6  ;;  %974 = vmatpush.msra.mxu0 %v1824_v21 }
  0x8d   :  { %907 = vmatpush.msrb.mxu2 %v1821_v34  ;;  %945 = vmatpush.msrb.mxu3 %v1383_v57 }
  0x8e   :  { %1029 = vmatpush.msra.mxu1 %v1224_v3  ;;  %978 = vmatpush.msra.mxu0 %v1825_v22  ;;  %v759_v3 = vsub.f32 %v757_v19, %v758_v20 }
  0x8f   :  { %910 = vmatpush.msrb.mxu2 %v1454_v42  ;;  %947 = vmatpush.msrb.mxu3 %v1402_v63 }
  0x90   :  { %1031 = vmatpush.msra.mxu1 %v1226_v4  ;;  %982 = vmatpush.msra.mxu0 %v1826_v23  ;;  %v760_v4 = vand.u32 4294901760, %v759_v3 }
  0x91   :  { %913 = vmatpush.msrb.mxu2 %v1468_v53  ;;  %949 = vmatpush.msrb.mxu3 %v1421_v8 }
  0x92   :  { %1033 = vmatpush.msra.mxu1 %v1228_v5  ;;  %986 = vmatpush.msra.mxu0 %v1333_v41  ;;  %v1827_v5 = vld [vmem:[#allocation9_spill] sm:$0xff] }
  0x93   :  { %916 = vmatmul.f32.vlgmr.msrb.gmra.mxu2 %v757_v19  ;;  %951 = vmatpush.msrb.mxu3 %v1428_v13  ;;  %v1107_v19 = vlaneseq }
  0x94   :  { %1035 = vmatpush.msra.mxu1 %v1239_v9  ;;  %990 = vmatpush.msra.mxu0 %v1827_v5 }
  0x95   :  { %761 = vmatmul.f32.vlgmr.msrb.gmra.mxu0 %v760_v4  ;;  %955 = vmatmul.f32.vlgmr.msrb.gmra.mxu3 %v758_v20  ;;  %v1108_v21 = vshrl.u32 %v1107_v19, 7  ;;  %v1110_v4 = vand.u32 127, %v1107_v19 }
  0x96   :  { %1037 = vmatpush.msra.mxu1 %v1241_v10  ;;  %994 = vmatpush.msra.mxu0 %v1381_v56 }
  0x97   :  { %862 = vmatmul.f32.vlgmr.msrb.gmra.mxu1 %v1716_v16  ;;  %v1114_v5 = vmul.u32 4, %v1108_v21 }
  0x98   :  { %1039 = vmatpush.msra.mxu1 %v1243_v11  ;;  %998 = vmatpush.msra.mxu0 %v1400_v62 }
  0x9a   :  { %1041 = vmatpush.msra.mxu1 %v1261_v17  ;;  %1002 = vmatpush.msra.mxu0 %v1419_v7 }
  0x9c   :  { %1043 = vmatpush.msra.mxu1 %v1287_v25  ;;  %1006 = vmatpush.msra.mxu0 %v1437_v30 }
  0x9e   :  { %1045 = vmatpush.msra.mxu1 %v1296_v28  ;;  %1010 = vmatpush.msra.mxu0 %v1451_v39 }
  0xa0   :  { %1047 = vmatpush.msra.mxu1 %v1316_v35  ;;  %1014 = vmatpush.msra.mxu0 %v1465_v48 }
  0xa2   :  { %1049 = vmatpush.msra.mxu1 %v1345_v45  ;;  %1018 = vmatpush.msra.mxu0 %v1479_v61 }
  0xa4   :  { %1051 = vmatpush.msra.mxu1 %v1364_v51  ;;  %1022 = vmatpush.msra.mxu0 %v1490_v26 }
  0xa5   :  { %1024 = vmatmul.f32.vlgmr.msra.gmra.mxu0 %v1716_v16 }
  0xa6   :  { %1053 = vmatpush.msra.mxu1 %v1383_v57 }
  0xa8   :  { %1055 = vmatpush.msra.mxu1 %v1402_v63 }
  0xaa   :  { %1057 = vmatpush.msra.mxu1 %v1421_v8 }
  0xac   :  { %1059 = vmatpush.msra.mxu1 %v1428_v13 }
  0xad   :  { %1061 = vmatmul.f32.vlgmr.msra.gmra.mxu1 %v1716_v16 }
  0xb8   :  { %v78_v9 = vpop.f32.mrf.mxu0 }
  0xbe   :  { %v179_v10 = vpop.f32.mrf.mxu1 }
  0xbf   :  { %v180_v17 = vadd.f32 %v179_v10, %v78_v9 }
  0xc0   :  { %v233_v11 = vpop.f32.mrf.mxu2  ;;  %v272_v25 = vpop.f32.mrf.mxu3 }
  0xc1   :  { %v234_v24 = vadd.f32 %v233_v11, %v180_v17 }
  0xc3   :  { %v273_v27 = vadd.f32 %v272_v25, %v234_v24  ;;  %v1115_v24 = vadd.s32 %v1114_v5, %v1110_v4 }
  0xc5   :  { %vm1116_vm8 = vcmp.lt.s32.totalorder %v1115_v24, 16 }
  0xc6   :  { %v341_v28 = vpop.f32.mrf.mxu0 }
  0xc7   :  { %v342_v29 = vadd.f32 %v341_v28, %v273_v27 }
  0xca   :  { %v378_v34 = vpop.f32.mrf.mxu1 }
  0xcb   :  { %v1777_v35 = vadd.f32 %v378_v34, %v342_v29 }
  0xe8   :  { %v420_v38 = vpop.f32.mrf.mxu2 }
  0xea   :  { %v521_v37 = vpop.f32.mrf.mxu3 }
  0xeb   :  { %v522_v40 = vadd.f32 %v521_v37, %v420_v38  ;;  %v1193_v38 = vmov 0.0  }
  0xec   :  { %20 = vst.msk [vmem:[#allocation2] sm:$0x1] %vm19_vm10, %v1193_v38 }
  0xee   :  { %v575_v41 = vpop.f32.mrf.mxu0 }
  0xef   :  { %v576_v43 = vadd.f32 %v575_v41, %v522_v40 }
  0xf0   :  { %v614_v45 = vpop.f32.mrf.mxu1 }
  0xf1   :  { %v615_v46 = vadd.f32 %v614_v45, %v576_v43 }
  0xf2   :  { %v683_v49 = vpop.f32.mrf.mxu2 }
  0xf3   :  { %v684_v50 = vadd.f32 %v683_v49, %v615_v46 }
  0xf4   :  { %v720_v51 = vpop.f32.mrf.mxu3 }
  0xf5   :  { %v721_v55 = vadd.f32 %v720_v51, %v684_v50  ;;  %v1119_v51 = vld [vmem:[#allocation2] sm:$0x1] }
  0xf7   :  { %1161 = vrsqrt.f32 %v721_v55  ;;  %vm1072_vm0 = vcmp.eq.f32.partialorder %v721_v55, inf  ;;  %v1075_v6 = vand.u32 2147483648, %v721_v55  ;;  %vm1074_vm1 = vcmp.eq.f32.partialorder %v721_v55, 0.0 }
  0xfd   :  { %v1162_v63 = vpop.eup %1161 }
  0xfe   :  { %v1066_v8 = vmul.f32 %v1162_v63, %v721_v55 }
 0x100   :  { %v1067_v30 = vmul.f32 %v1162_v63, %v1066_v8 }
 0x102   :  { %v1068_v44 = vmul.f32 0.5, %v1067_v30 }
 0x104   :  { %v1069_v48 = vsub.f32 1.5, %v1068_v44 }
 0x106   :  { %v1070_v54 = vmul.f32 %v1162_v63, %v1069_v48 }
 0x108   :  { %v1071_v26 = vmul.f32 %v1070_v54, %v721_v55 }
 0x10a   :  { %v1073_v0 = vsel %vm1072_vm0, %v721_v55, %v1071_v26 }
 0x10b   :  { %v1076_v52 = vsel %vm1074_vm1, %v1075_v6, %v1073_v0 }
 0x10c   :  { %v1077_v14 = vmax.f32 %v1076_v52, 1e-08 }
 0x112   :  { %v762_v57 = vpop.f32.mrf.mxu0 }
 0x114   :  { %v863_v56 = vpop.f32.mrf.mxu1 }
 0x115   :  { %v864_v58 = vadd.f32 %v863_v56, %v762_v57 }
 0x116   :  { %v917_v62 = vpop.f32.mrf.mxu2 }
 0x117   :  { %v918_v2 = vadd.f32 %v917_v62, %v864_v58 }
 0x118   :  { %v956_v7 = vpop.f32.mrf.mxu3 }
 0x119   :  { %v957_v13 = vadd.f32 %v956_v7, %v918_v2 }
 0x122   :  { %v1025_v18 = vpop.f32.mrf.mxu0 }
 0x123   :  { %v1026_v32 = vadd.f32 %v1025_v18, %v957_v13 }
 0x12a   :  { %v1062_v39 = vpop.f32.mrf.mxu1 }
 0x12b   :  { %v1063_v42 = vadd.f32 %v1062_v39, %v1026_v32 }
 0x12d   :  { %1163 = vrsqrt.f32 %v1063_v42  ;;  %vm1085_vm2 = vcmp.eq.f32.partialorder %v1063_v42, inf  ;;  %v1088_v31 = vand.u32 2147483648, %v1063_v42  ;;  %vm1087_vm3 = vcmp.eq.f32.partialorder %v1063_v42, 0.0 }
 0x133   :  { %v1164_v53 = vpop.eup %1163 }
 0x134   :  { %v1079_v61 = vmul.f32 %v1164_v53, %v1063_v42 }
 0x136   :  { %v1080_v1 = vmul.f32 %v1164_v53, %v1079_v61 }
 0x138   :  { %v1081_v36 = vmul.f32 0.5, %v1080_v1 }
 0x13a   :  { %v1082_v60 = vsub.f32 1.5, %v1081_v36 }
 0x13c   :  { %v1083_v12 = vmul.f32 %v1164_v53, %v1082_v60 }
 0x13e   :  { %v1084_v47 = vmul.f32 %v1083_v12, %v1063_v42 }
 0x140   :  { %v1086_v59 = vsel %vm1085_vm2, %v1063_v42, %v1084_v47 }
 0x141   :  { %v1089_v33 = vsel %vm1087_vm3, %v1088_v31, %v1086_v59 }
 0x142   :  { %v1090_v15 = vmax.f32 %v1089_v33, 1e-08 }
 0x144   :  { %v1091_v16 = vmul.f32 %v1090_v15, %v1077_v14 }
 0x146   :  { %1165 = vrcp.f32 %v1091_v16  ;;  %v1103_v23 = vand.u32 2147483648, %v1091_v16  ;;  %v1101_v10 = vand.u32 2147483647, %v1091_v16  ;;  %vm1097_vm5 = vweird.f32 %v1091_v16 }
 0x148   :  { %v1104_v17 = vor.u32 1.1754944e-38, %v1103_v23  ;;  %vm1102_vm7 = vcmp.eq.f32.partialorder %v1101_v10, 8.507059e+37 }
 0x14c   :  { %v1166_v20 = vpop.eup %1165 }
 0x14d   :  { %v1093_v22 = vmul.f32 %v1166_v20, %v1091_v16  ;;  %vm1098_vm4 = vweird.f32 %v1166_v20 }
 0x14e   :  { %vm1099_vm6 = vmor %vm1097_vm5, %vm1098_vm4 }
 0x14f   :  { %v1094_v3 = vsub.f32 1.0, %v1093_v22 }
 0x151   :  { %v1095_v9 = vmul.f32 %v1166_v20, %v1094_v3 }
 0x153   :  { %v1096_v11 = vadd.f32 %v1166_v20, %v1095_v9 }
 0x155   :  { %v1100_v25 = vsel %vm1099_vm6, %v1166_v20, %v1096_v11 }
 0x156   :  { %v1105_v27 = vsel %vm1102_vm7, %v1104_v17, %v1100_v25 }
 0x157   :  { %v1106_v28 = vmul.f32 %v1105_v27, %v1777_v35 }
 0x159   :  { %v1117_v29 = vsub.f32 1.0, %v1106_v28 }
 0x15b   :  { %v1118_v34 = vsel %vm1116_vm8, %v1117_v29, 0.0 }
 0x15c   :  { %v1121_v37 = vsel %vm1120_vm9, %v1118_v34, 0.0 }
 0x15d   :  { %1122 = vadd.xlane.f32.xlu0 %v1121_v37 }
 0x1d0   :  { %v1123_v40 = vpop.xlane.xlu0 %1122 }
 0x1d1   :  { %v1124_v41 = vrot.slane %v1123_v40, 4 }
 0x1d3   :  { %v1125_v43 = vadd.f32 %v1124_v41, %v1123_v40 }
 0x1d5   :  { %v1126_v45 = vrot.slane %v1125_v43, 2 }
 0x1d7   :  { %v1127_v46 = vadd.f32 %v1126_v45, %v1125_v43 }
 0x1d9   :  { %v1128_v49 = vrot.slane %v1127_v46, 1 }
 0x1db   :  { %v1129_v50 = vadd.f32 %v1128_v49, %v1127_v46 }
 0x1dd   :  { %1157 = vpush %v1129_v50 }
 0x20e   :  { %s1158_s0 = spop %1157 }
 0x20f   :  { %v1131_v35 = vstv %s1158_s0 }
 0x210   :  { %v1132_v55 = vadd.f32 %v1131_v35, %v1119_v51 }
 0x212   :  { %1134 = vst.msk [vmem:[#allocation2] sm:$0x1] %vm19_vm10, %v1132_v55 }
 0x219   :  { %v1138_v56 = vld [vmem:[#allocation2] sm:$0x1] }
 0x21a   :  { %v1139_v57 = vmul.f32 0.0625, %v1138_v56 }
 0x21c   :  { %1140 = vst.msk [vmem:[#allocation3] sm:$0x1] %vm19_vm10, %v1139_v57 }
 0x21d   :  { %1151 = dma.vmem_to_hbm [thread:$0]  %s1147_s20, 16, %s1149_s23, [#allocation4]  }
 0x21e   :  { %1191 = dma.done.wait [#allocation4], 16  }
 0x21f   :  { %1192 = vsyncadd [#allocation4], 4294967280 }
 0x220   :  { %1156 = vsyncpa [#allocation4], 1 }

</bundles_post_ra>
